<compile_context>
chip_gen: v5e
topology: v5e:2x2
jax: 0.10.0
libtpu: 0.0.40
codegen_flags: <defaults>
</compile_context>

<pallas_src>
import functools
import math

import jax
import jax.numpy as jnp
from jax.experimental import pallas as pl
from jax.experimental.pallas import tpu as pltpu

_INV_SQRT2 = 1.0 / math.sqrt(2.0)


def _round_up(x, m):
    return ((x + m - 1) // m) * m


def _sublane(dtype):
    sz = jnp.dtype(dtype).itemsize
    if sz >= 4:
        return 8
    if sz == 2:
        return 16
    return 32


def _vmem_limit_bytes():
    """Chip-aware scoped-VMEM limit: capacity minus headroom for Mosaic
    scratch / semaphores (~53 MiB on v7x, ~107 MiB on v5e/v6e)."""
    try:
        cap = int(pltpu.get_tpu_info().vmem_capacity_bytes)
    except Exception:
        cap = 64 * 1024 * 1024            # conservative fallback (v7x physical)
    return cap - max(8 * 1024 * 1024, cap // 6)


def _ffn_kernel(x_ref, w1_ref, b1_ref, w2_ref, b2_ref, o_ref, acc_ref):
    # x_ref:  (tile_m, d_model)        w1_ref: (d_model, tile_k)
    # b1_ref: (1, tile_k) f32          w2_ref: (tile_k, d_model)
    # b2_ref: (1, d_model) f32         o_ref:  (tile_m, d_model)
    # acc_ref: (tile_m, d_model) f32 scratch, resident across the k axis.
    k = pl.program_id(1)

    @pl.when(k == 0)
    def _():
        acc_ref[...] = jnp.zeros_like(acc_ref)

    x = x_ref[...]

    # fc1 slice + exact GELU (erf based, same as torch.nn.GELU() default).
    h = jnp.dot(x, w1_ref[...], preferred_element_type=jnp.float32) + b1_ref[...]
    h = 0.5 * h * (1.0 + jax.lax.erf(h * _INV_SQRT2))

    # fc2 partial product for this middle slice, accumulated in f32.
    acc_ref[...] += jnp.dot(h.astype(x.dtype), w2_ref[...],
                            preferred_element_type=jnp.float32)

    @pl.when(k == pl.num_programs(1) - 1)
    def _():
        o_ref[...] = (acc_ref[...] + b2_ref[...]).astype(o_ref.dtype)


@functools.partial(jax.jit, static_argnames=("tile_m", "tile_k", "compute_dtype"))
def feed_forward(x, w1, b1, w2, b2, *, tile_m=1024, tile_k=1024,
                 compute_dtype=jnp.bfloat16):
    """x: [B, S, d_model]; w1: [d_model, middle]; b1: [middle];
    w2: [middle, d_model]; b2: [d_model].  Weights pre-transposed ([in, out]).
    Matmuls run in `compute_dtype` (bf16 by default) with f32 accumulation;
    output dtype matches x.dtype."""
    B, S, d_model = x.shape
    middle = w1.shape[1]
    tokens = B * S
    out_dtype = x.dtype

    cdt = jnp.dtype(compute_dtype)
    cdt_size = cdt.itemsize
    out_size = jnp.dtype(out_dtype).itemsize
    sub = _sublane(cdt)

    # ---- cast to compute dtype; pad d_model to a lane-dense multiple of 128
    d_model_p = _round_up(d_model, 128)
    x2d = x.reshape(tokens, d_model).astype(cdt)
    w1c = w1.astype(cdt)
    w2c = w2.astype(cdt)
    b1f = b1.astype(jnp.float32)
    b2f = b2.astype(jnp.float32)
    if d_model_p != d_model:
        pad_d = d_model_p - d_model
        x2d = jnp.pad(x2d, ((0, 0), (0, pad_d)))      # zero cols * zero W1 rows
        w1c = jnp.pad(w1c, ((0, pad_d), (0, 0)))      #   -> exact no-op
        w2c = jnp.pad(w2c, ((0, 0), (0, pad_d)))      # extra out cols sliced off
        b2f = jnp.pad(b2f, ((0, pad_d),))

    # ---- VMEM-aware tile sizing --------------------------------------------
    vmem_limit = _vmem_limit_bytes()
    budget = int(vmem_limit * 0.88)       # size tiles with margin vs the limit

    # middle-axis (reduction) tile: weight slices (double-buffered W1 + W2)
    # may take at most ~60% of the budget.
    per_tk = 4 * d_model_p * cdt_size + 8
    tk_cap = max(128, ((budget * 6 // 10) // per_tk) // 128 * 128)

    if middle <= min(tile_k, tk_cap):
        tk = middle
        middle_p = middle
    else:
        tk = max(128, (min(tile_k, tk_cap) // 128) * 128)
        middle_p = _round_up(middle, tk)
        if middle_p != middle:            # zero padding is an exact no-op
            w1c = jnp.pad(w1c, ((0, 0), (0, middle_p - middle)))
            b1f = jnp.pad(b1f, ((0, middle_p - middle),))
            w2c = jnp.pad(w2c, ((0, middle_p - middle), (0, 0)))

    # token-axis tile: largest multiple of the sublane tile that fits the
    # remaining budget (x + out double-buffered + f32 accumulator).
    w_bytes = 4 * d_model_p * tk * cdt_size + 2 * (tk + d_model_p) * 4
    per_row = d_model_p * (2 * cdt_size + 2 * out_size + 4)
    rem = max(0, budget - w_bytes)
    tm_cap = max(sub, ((rem // per_row) // sub) * sub)
    tm_req = max(sub, (tile_m // sub) * sub)
    tm = min(tm_req, _round_up(tokens, sub), tm_cap)

    tokens_p = _round_up(tokens, tm)
    if tokens_p != tokens:
        x2d = jnp.pad(x2d, ((0, tokens_p - tokens), (0, 0)))

    b1_2d = b1f.reshape(1, middle_p)
    b2_2d = b2f.reshape(1, d_model_p)

    grid = (tokens_p // tm, middle_p // tk)
    num_token_tiles = tokens_p // tm

    cost = pl.CostEstimate(
        flops=int(2 * tokens_p * d_model_p * middle_p * 2),
        transcendentals=int(tokens_p * middle_p),
        bytes_accessed=int(
            tokens_p * d_model_p * (cdt_size + out_size)        # x in + out
            + num_token_tiles * 2 * d_model_p * middle_p * cdt_size  # W1+W2 re-streamed
            + (middle_p + d_model_p) * 4),                      # biases
    )

    out2d = pl.pallas_call(
        _ffn_kernel,
        out_shape=jax.ShapeDtypeStruct((tokens_p, d_model_p), out_dtype),
        grid_spec=pltpu.PrefetchScalarGridSpec(
            num_scalar_prefetch=0,
            grid=grid,
            in_specs=[
                pl.BlockSpec((tm, d_model_p), lambda i, k: (i, 0)),    # x tile
                pl.BlockSpec((d_model_p, tk), lambda i, k: (0, k)),    # W1[:, k]
                pl.BlockSpec((1, tk), lambda i, k: (0, k)),            # b1[k]
                pl.BlockSpec((tk, d_model_p), lambda i, k: (k, 0)),    # W2[k, :]
                pl.BlockSpec((1, d_model_p), lambda i, k: (0, 0)),     # b2
            ],
            out_specs=pl.BlockSpec((tm, d_model_p), lambda i, k: (i, 0)),
            scratch_shapes=[pltpu.VMEM((tm, d_model_p), jnp.float32)],
        ),
        compiler_params=pltpu.CompilerParams(
            dimension_semantics=("parallel", "arbitrary"),
            vmem_limit_bytes=int(vmem_limit),
        ),
        cost_estimate=cost,
    )(x2d, w1c, b1_2d, w2c, b2_2d)

    return out2d[:tokens, :d_model].reshape(B, S, d_model)


def _ref_feed_forward(x2d, w1, b1, w2, b2):
    h = x2d @ w1 + b1
    h = 0.5 * h * (1.0 + jax.lax.erf(h / jnp.sqrt(2.0)))
    return h @ w2 + b2


def _make_params(key, d_model, middle, dtype=jnp.float32):
    k1, k2, k3, k4 = jax.random.split(key, 4)
    lim1 = 1.0 / math.sqrt(d_model)
    lim2 = 1.0 / math.sqrt(middle)
    # nn.Linear weight is [out, in]; stored pre-transposed as [in, out].
    w1 = jax.random.uniform(k1, (d_model, middle), dtype, -lim1, lim1)
    b1 = jax.random.uniform(k2, (middle,), dtype, -lim1, lim1)
    w2 = jax.random.uniform(k3, (middle, d_model), dtype, -lim2, lim2)
    b2 = jax.random.uniform(k4, (d_model,), dtype, -lim2, lim2)
    return w1, b1, w2, b2


if __name__ == "__main__":
    key = jax.random.PRNGKey(0)

    # --- Case 1: small shapes, exact f32 path (parity with torch reference) -
    # batch=2, seq=8, d_model=32, middle_dim=64 (stand-in for 2048).
    B, S, d_model, middle = 2, 8, 32, 64
    kx, kp = jax.random.split(key)
    x = jax.random.normal(kx, (B, S, d_model), dtype=jnp.float32)
    w1, b1, w2, b2 = _make_params(kp, d_model, middle)

    out = jax.block_until_ready(
        feed_forward(x, w1, b1, w2, b2, compute_dtype=jnp.float32))
    ref = _ref_feed_forward(x.reshape(-1, d_model), w1, b1, w2, b2)
    assert out.shape == (B, S, d_model)
    assert jnp.allclose(out, ref.reshape(B, S, d_model), atol=1e-5, rtol=1e-5), \
        "mismatch vs reference (case 1, f32)"

    # --- Case 2: production bf16 path; exercises token padding, d_model
    #     padding (192 -> 256) and middle-dim streaming (384 in 3 k-steps). --
    B2, S2, d_model2, middle2 = 2, 25, 192, 384
    kx2, kp2 = jax.random.split(jax.random.PRNGKey(1))
    x2 = jax.random.normal(kx2, (B2, S2, d_model2), dtype=jnp.float32)
    w1b, b1b, w2b, b2b = _make_params(kp2, d_model2, middle2)

    out2 = jax.block_until_ready(
        feed_forward(x2, w1b, b1b, w2b, b2b, tile_k=128,
                     compute_dtype=jnp.bfloat16))
    ref2 = _ref_feed_forward(x2.reshape(-1, d_model2), w1b, b1b, w2b, b2b)
    assert out2.shape == (B2, S2, d_model2)
    assert jnp.allclose(out2, ref2.reshape(B2, S2, d_model2),
                        atol=3e-2, rtol=3e-2), "mismatch vs reference (case 2, bf16)"

    print("KERNEL_OK")
</pallas_src>

<mosaic_0001>
module attributes {stable_mosaic.version = 11 : i64} {
  func.func @_ffn_kernel(%arg0: i32, %arg1: i32, %arg2: memref<16x128xf32, #tpu.memory_space<vmem>>, %arg3: memref<128x64xf32, #tpu.memory_space<vmem>>, %arg4: memref<1x64xf32, #tpu.memory_space<vmem>>, %arg5: memref<64x128xf32, #tpu.memory_space<vmem>>, %arg6: memref<1x128xf32, #tpu.memory_space<vmem>>, %arg7: memref<16x128xf32, #tpu.memory_space<vmem>>, %arg8: memref<16x128xf32, #tpu.memory_space<vmem>>) attributes {dimension_semantics = [#tpu.dimension_semantics<parallel>, #tpu.dimension_semantics<arbitrary>], iteration_bounds = array<i64: 1, 1>, scalar_prefetch = 0 : i64, scratch_operands = 1 : i64, tpu.core_type = #tpu.core_type<tc>, window_params = [{transform_indices = @transform_0, window_bounds = array<i64: 16, 128>}, {transform_indices = @transform_1, window_bounds = array<i64: 128, 64>}, {transform_indices = @transform_2, window_bounds = array<i64: 1, 64>}, {transform_indices = @transform_3, window_bounds = array<i64: 64, 128>}, {pipeline_mode = #tpu.pipeline_mode<synchronous>, transform_indices = @transform_4, window_bounds = array<i64: 1, 128>}, {transform_indices = @transform_5, window_bounds = array<i64: 16, 128>}]} {
    %c0_i32 = arith.constant 0 : i32
    %0 = arith.cmpi eq, %arg1, %c0_i32 : i32
    %1 = arith.extui %0 : i1 to i32
    %c0_i32_0 = arith.constant 0 : i32
    %2 = arith.cmpi ne, %1, %c0_i32_0 : i32
    scf.if %2 {
      %cst_18 = arith.constant 0.000000e+00 : f32
      %25 = vector.broadcast %cst_18 : f32 to vector<16x128xf32>
      %c0_19 = arith.constant 0 : index
      %c0_20 = arith.constant 0 : index
      %26 = vector.load %arg8[%c0_19, %c0_20] : memref<16x128xf32, #tpu.memory_space<vmem>>, vector<16x128xf32>
      tpu.vector_store %arg8[%c0_19, %c0_20], %25 {strides = array<i32>} : memref<16x128xf32, #tpu.memory_space<vmem>>, vector<16x128xf32>,
    } else {
    }
    %c0 = arith.constant 0 : index
    %c0_1 = arith.constant 0 : index
    %3 = vector.load %arg2[%c0, %c0_1] : memref<16x128xf32, #tpu.memory_space<vmem>>, vector<16x128xf32>
    %c0_2 = arith.constant 0 : index
    %c0_3 = arith.constant 0 : index
    %4 = vector.load %arg3[%c0_2, %c0_3] : memref<128x64xf32, #tpu.memory_space<vmem>>, vector<128x64xf32>
    %cst = arith.constant dense<0.000000e+00> : vector<16x64xf32>
    %5 = tpu.matmul %3, %4, %cst {dimension_numbers = #tpu.dot_dimension_numbers<[1], [0], [0], [1], [0, 0, 1, 1], [], []>} : vector<16x128xf32>, vector<128x64xf32>, vector<16x64xf32> -> vector<16x64xf32>
    %c0_4 = arith.constant 0 : index
    %c0_5 = arith.constant 0 : index
    %6 = vector.load %arg4[%c0_4, %c0_5] : memref<1x64xf32, #tpu.memory_space<vmem>>, vector<1x64xf32>
    %7 = vector.broadcast %6 : vector<1x64xf32> to vector<16x64xf32>
    %8 = arith.addf %5, %7 : vector<16x64xf32>
    %cst_6 = arith.constant 5.000000e-01 : f32
    %9 = vector.broadcast %cst_6 : f32 to vector<16x64xf32>
    %10 = arith.mulf %9, %8 : vector<16x64xf32>
    %cst_7 = arith.constant 0.707106769 : f32
    %11 = vector.broadcast %cst_7 : f32 to vector<16x64xf32>
    %12 = arith.mulf %8, %11 : vector<16x64xf32>
    %13 = math.erf %12 : vector<16x64xf32>
    %cst_8 = arith.constant 1.000000e+00 : f32
    %14 = vector.broadcast %cst_8 : f32 to vector<16x64xf32>
    %15 = arith.addf %14, %13 : vector<16x64xf32>
    %16 = arith.mulf %10, %15 : vector<16x64xf32>
    %c0_9 = arith.constant 0 : index
    %c0_10 = arith.constant 0 : index
    %17 = vector.load %arg8[%c0_9, %c0_10] : memref<16x128xf32, #tpu.memory_space<vmem>>, vector<16x128xf32>
    %c0_11 = arith.constant 0 : index
    %c0_12 = arith.constant 0 : index
    %18 = vector.load %arg5[%c0_11, %c0_12] : memref<64x128xf32, #tpu.memory_space<vmem>>, vector<64x128xf32>
    %cst_13 = arith.constant dense<0.000000e+00> : vector<16x128xf32>
    %19 = tpu.matmul %16, %18, %cst_13 {dimension_numbers = #tpu.dot_dimension_numbers<[1], [0], [0], [1], [0, 0, 1, 1], [], []>} : vector<16x64xf32>, vector<64x128xf32>, vector<16x128xf32> -> vector<16x128xf32>
    %20 = arith.addf %17, %19 : vector<16x128xf32>
    %c0_14 = arith.constant 0 : index
    %c0_15 = arith.constant 0 : index
    %21 = vector.load %arg8[%c0_14, %c0_15] : memref<16x128xf32, #tpu.memory_space<vmem>>, vector<16x128xf32>
    tpu.vector_store %arg8[%c0_14, %c0_15], %20 {strides = array<i32>} : memref<16x128xf32, #tpu.memory_space<vmem>>, vector<16x128xf32>,
    %c0_i32_16 = arith.constant 0 : i32
    %22 = arith.cmpi eq, %arg1, %c0_i32_16 : i32
    %23 = arith.extui %22 : i1 to i32
    %c0_i32_17 = arith.constant 0 : i32
    %24 = arith.cmpi ne, %23, %c0_i32_17 : i32
    scf.if %24 {
      %c0_18 = arith.constant 0 : index
      %c0_19 = arith.constant 0 : index
      %25 = vector.load %arg8[%c0_18, %c0_19] : memref<16x128xf32, #tpu.memory_space<vmem>>, vector<16x128xf32>
      %c0_20 = arith.constant 0 : index
      %c0_21 = arith.constant 0 : index
      %26 = vector.load %arg6[%c0_20, %c0_21] : memref<1x128xf32, #tpu.memory_space<vmem>>, vector<1x128xf32>
      %27 = vector.broadcast %26 : vector<1x128xf32> to vector<16x128xf32>
      %28 = arith.addf %25, %27 : vector<16x128xf32>
      %c0_22 = arith.constant 0 : index
      %c0_23 = arith.constant 0 : index
      %29 = vector.load %arg7[%c0_22, %c0_23] : memref<16x128xf32, #tpu.memory_space<vmem>>, vector<16x128xf32>
      tpu.vector_store %arg7[%c0_22, %c0_23], %28 {strides = array<i32>} : memref<16x128xf32, #tpu.memory_space<vmem>>, vector<16x128xf32>,
    } else {
    }
    return
  }
  func.func @transform_0(%arg0: i32, %arg1: i32) -> (i32, i32) {
    %c0_i32 = arith.constant 0 : i32
    %c0_i32_0 = arith.constant 0 : i32
    return %arg0, %c0_i32 : i32, i32
  }
  func.func @transform_1(%arg0: i32, %arg1: i32) -> (i32, i32) {
    %c0_i32 = arith.constant 0 : i32
    %c0_i32_0 = arith.constant 0 : i32
    return %c0_i32, %arg1 : i32, i32
  }
  func.func @transform_2(%arg0: i32, %arg1: i32) -> (i32, i32) {
    %c0_i32 = arith.constant 0 : i32
    %c0_i32_0 = arith.constant 0 : i32
    return %c0_i32, %arg1 : i32, i32
  }
  func.func @transform_3(%arg0: i32, %arg1: i32) -> (i32, i32) {
    %c0_i32 = arith.constant 0 : i32
    %c0_i32_0 = arith.constant 0 : i32
    return %arg1, %c0_i32 : i32, i32
  }
  func.func @transform_4(%arg0: i32, %arg1: i32) -> (i32, i32) {
    %c0_i32 = arith.constant 0 : i32
    %c0_i32_0 = arith.constant 0 : i32
    %c0_i32_1 = arith.constant 0 : i32
    return %c0_i32, %c0_i32_0 : i32, i32
  }
  func.func @transform_5(%arg0: i32, %arg1: i32) -> (i32, i32) {
    %c0_i32 = arith.constant 0 : i32
    %c0_i32_0 = arith.constant 0 : i32
    return %arg0, %c0_i32 : i32, i32
  }
}

</mosaic_0001>

<bundles_post_ra>
// kernel: feed_forward.1
= control target key start
LH: loop header
LB: loop body
LE: loop exit
PB: predicated region body
PF: predicated region fallthrough
CT: control target
= control target key end

     0   :  { %vm169_vm8 = vcmask 523264   ;;  %s384_s1 = inlined_call_operand.vmem [shape: f32[128,64], index: 1, kind: input, shape index: {}]   ;;  %s385_s2 = inlined_call_operand.vmem [shape: f32[1,64], index: 2, kind: input, shape index: {}]   ;;  %s386_s0 = inlined_call_operand.vmem [shape: f32[16,128], index: 0, kind: input, shape index: {}]   ;;  %s387_s4 = inlined_call_operand.vmem [shape: f32[1,128], index: 4, kind: input, shape index: {}]   ;;  %s388_s3 = inlined_call_operand.vmem [shape: f32[64,128], index: 3, kind: input, shape index: {}]   ;;  %s389_s5 = inlined_call_operand.vmem [shape: f32[16,128], index: 5, kind: output, shape index: {}]  }
   0x1   :  { %v43_v0 = vld [vmem:[%s384_s1 + $0x78] sm:$0xff]  ;;  %v42_v1 = vld [vmem:[%s384_s1 + $0x70] sm:$0xff]  ;;  %v41_v2 = vld [vmem:[%s384_s1 + $0x68] sm:$0xff] }
   0x2   :  { %48 = vmatpush.msra.mxu0 %v43_v0  ;;  %224 = vmatpush.msra.mxu2 %v43_v0  ;;  %v40_v3 = vld [vmem:[%s384_s1 + $0x60] sm:$0xff]  ;;  %v39_v4 = vld [vmem:[%s384_s1 + $0x58] sm:$0xff]  ;;  %v38_v5 = vld [vmem:[%s384_s1 + $0x50] sm:$0xff] }
   0x3   :  { %v37_v6 = vld [vmem:[%s384_s1 + $0x48] sm:$0xff]  ;;  %v36_v7 = vld [vmem:[%s384_s1 + $0x40] sm:$0xff]  ;;  %v35_v8 = vld [vmem:[%s384_s1 + $0x38] sm:$0xff] }
   0x4   :  { %49 = vmatpush.msra.mxu0 %v42_v1  ;;  %225 = vmatpush.msra.mxu2 %v42_v1  ;;  %v34_v9 = vld [vmem:[%s384_s1 + $0x30] sm:$0xff]  ;;  %v33_v10 = vld [vmem:[%s384_s1 + $0x28] sm:$0xff]  ;;  %v32_v11 = vld [vmem:[%s384_s1 + $0x20] sm:$0xff] }
   0x5   :  { %v31_v12 = vld [vmem:[%s384_s1 + $0x18] sm:$0xff]  ;;  %v30_v13 = vld [vmem:[%s384_s1 + $0x10] sm:$0xff]  ;;  %v29_v14 = vld [vmem:[%s384_s1 + $0x8] sm:$0xff] }
   0x6   :  { %50 = vmatpush.msra.mxu0 %v41_v2  ;;  %226 = vmatpush.msra.mxu2 %v41_v2  ;;  %v28_v15 = vld [vmem:[%s384_s1] sm:$0xff]  ;;  %v27_v17 = vld [vmem:[%s386_s0 + $0x8] sm:$0xff]  ;;  %v168_v26 = vld [vmem:[%s388_s3 + $0x38] sm:$0xff] }
   0x7   :  { %v26_v16 = vld [vmem:[%s386_s0] sm:$0xff]  ;;  %184 = vmatpush.msra.mxu1 %v168_v26  ;;  %v167_v30 = vld [vmem:[%s388_s3 + $0x30] sm:$0xff]  ;;  %v166_v34 = vld [vmem:[%s388_s3 + $0x28] sm:$0xff] }
   0x8   :  { %51 = vmatpush.msra.mxu0 %v40_v3  ;;  %227 = vmatpush.msra.mxu2 %v40_v3  ;;  %v240_v18 = vld [vmem:[%s385_s2] ss:$0 sm:$0xff]  ;;  %v164_v43 = vld [vmem:[%s388_s3 + $0x18] sm:$0xff]  ;;  %v163_v47 = vld [vmem:[%s388_s3 + $0x10] sm:$0xff] }
   0x9   :  { %185 = vmatpush.msra.mxu1 %v167_v30  ;;  %v165_v38 = vld [vmem:[%s388_s3 + $0x20] sm:$0xff]  ;;  %v162_v52 = vld [vmem:[%s388_s3 + $0x8] sm:$0xff] }
   0xa   :  { %52 = vmatpush.msra.mxu0 %v39_v4  ;;  %228 = vmatpush.msra.mxu2 %v39_v4  ;;  %v161_v54 = vld [vmem:[%s388_s3] sm:$0xff] }
   0xb   :  { %186 = vmatpush.msra.mxu1 %v166_v34 }
   0xc   :  { %53 = vmatpush.msra.mxu0 %v38_v5  ;;  %229 = vmatpush.msra.mxu2 %v38_v5 }
   0xd   :  { %187 = vmatpush.msra.mxu1 %v165_v38 }
   0xe   :  { %54 = vmatpush.msra.mxu0 %v37_v6  ;;  %230 = vmatpush.msra.mxu2 %v37_v6 }
   0xf   :  { %188 = vmatpush.msra.mxu1 %v164_v43 }
  0x10   :  { %55 = vmatpush.msra.mxu0 %v36_v7  ;;  %231 = vmatpush.msra.mxu2 %v36_v7 }
  0x11   :  { %189 = vmatpush.msra.mxu1 %v163_v47 }
  0x12   :  { %56 = vmatpush.msra.mxu0 %v35_v8  ;;  %232 = vmatpush.msra.mxu2 %v35_v8 }
  0x13   :  { %190 = vmatpush.msra.mxu1 %v162_v52 }
  0x14   :  { %57 = vmatpush.msra.mxu0 %v34_v9  ;;  %233 = vmatpush.msra.mxu2 %v34_v9 }
  0x15   :  { %191 = vmatpush.msra.mxu1 %v161_v54 }
  0x16   :  { %58 = vmatpush.msra.mxu0 %v33_v10  ;;  %234 = vmatpush.msra.mxu2 %v33_v10 }
  0x18   :  { %59 = vmatpush.msra.mxu0 %v32_v11  ;;  %235 = vmatpush.msra.mxu2 %v32_v11 }
  0x1a   :  { %60 = vmatpush.msra.mxu0 %v31_v12  ;;  %236 = vmatpush.msra.mxu2 %v31_v12 }
  0x1c   :  { %61 = vmatpush.msra.mxu0 %v30_v13  ;;  %237 = vmatpush.msra.mxu2 %v30_v13 }
  0x1e   :  { %62 = vmatpush.msra.mxu0 %v29_v14  ;;  %238 = vmatpush.msra.mxu2 %v29_v14 }
  0x20   :  { %63 = vmatpush.msra.mxu0 %v28_v15  ;;  %239 = vmatpush.msra.mxu2 %v28_v15 }
  0x21   :  { %64 = vmatmul.f32.vlgmr.msra.gmra.mxu0 %v26_v16  ;;  %67 = vmatmul.f32.vlgmr.msra.gmra.mxu2 %v27_v17 }
  0x9e   :  { %v65_v19 = vpop.f32.mrf.mxu0 }
  0x9f   :  { %v333_v20 = vadd.f32 %v240_v18, %v65_v19 }
  0xa1   :  { %v336_v21 = vmul.f32 0.70710677, %v333_v20  ;;  %v71_v38 = vmul.f32 0.5, %v333_v20  ;;  %v241_v20 = vld [vmem:[%s387_s4] ss:$0 sm:$0xff] }
  0xa3   :  { %v75_v22 = vmul.f32 %v336_v21, %v336_v21 }
  0xa4   :  { %v68_v23 = vpop.f32.mrf.mxu2 }
  0xa5   :  { %v76_v24 = vmin.f32 %v75_v22, 16.0  ;;  %v340_v25 = vadd.f32 %v240_v18, %v68_v23 }
  0xa7   :  { %v77_v27 = vmul.f32 2.1237322e-06, %v76_v24  ;;  %v88_v28 = vmul.f32 3.8918573e-05, %v76_v24  ;;  %v346_v29 = vmul.f32 0.70710677, %v340_v25 }
  0xa9   :  { %v78_v31 = vadd.f32 0.00028619796, %v77_v27  ;;  %v89_v32 = vadd.f32 0.001143296, %v88_v28  ;;  %v115_v33 = vmul.f32 %v346_v29, %v346_v29 }
  0xab   :  { %v79_v35 = vmul.f32 %v78_v31, %v76_v24  ;;  %v90_v36 = vmul.f32 %v89_v32, %v76_v24  ;;  %v116_v37 = vmin.f32 %v115_v33, 16.0 }
  0xad   :  { %v80_v39 = vadd.f32 0.0036580483, %v79_v35  ;;  %v91_v40 = vadd.f32 0.014752088, %v90_v36  ;;  %v117_v41 = vmul.f32 2.1237322e-06, %v116_v37 }
  0xae   :  { %v128_v42 = vmul.f32 3.8918573e-05, %v116_v37 }
  0xaf   :  { %v92_v44 = vmul.f32 %v91_v40, %v76_v24  ;;  %v118_v45 = vadd.f32 0.00028619796, %v117_v41  ;;  %v81_v49 = vmul.f32 %v80_v39, %v76_v24 }
  0xb0   :  { %v129_v46 = vadd.f32 0.001143296, %v128_v42 }
  0xb1   :  { %v93_v48 = vadd.f32 0.112945676, %v92_v44  ;;  %v119_v50 = vmul.f32 %v118_v45, %v116_v37  ;;  %v82_v58 = vadd.f32 0.05243302, %v81_v49 }
  0xb2   :  { %v130_v51 = vmul.f32 %v129_v46, %v116_v37  ;;  %v72_v46 = vmul.f32 0.5, %v340_v25 }
  0xb3   :  { %v94_v53 = vmul.f32 %v93_v48, %v76_v24  ;;  %v120_v57 = vadd.f32 0.0036580483, %v119_v50  ;;  %v83_v0 = vmul.f32 %v82_v58, %v76_v24 }
  0xb4   :  { %v131_v55 = vadd.f32 0.014752088, %v130_v51 }
  0xb5   :  { %v95_v56 = vadd.f32 0.4994258, %v94_v53  ;;  %v121_v63 = vmul.f32 %v120_v57, %v116_v37  ;;  %v84_v4 = vadd.f32 0.18741608, %v83_v0 }
  0xb6   :  { %v132_v59 = vmul.f32 %v131_v55, %v116_v37 }
  0xb7   :  { %v96_v60 = vmul.f32 %v95_v56, %v76_v24  ;;  %v122_v3 = vadd.f32 0.05243302, %v121_v63  ;;  %v85_v9 = vmul.f32 %v84_v4, %v76_v24 }
  0xb8   :  { %v133_v61 = vadd.f32 0.112945676, %v132_v59 }
  0xb9   :  { %v97_v62 = vadd.f32 1.0, %v96_v60  ;;  %v123_v8 = vmul.f32 %v122_v3, %v116_v37  ;;  %v86_v14 = vadd.f32 1.1283791, %v85_v9 }
  0xba   :  { %v134_v1 = vmul.f32 %v133_v61, %v116_v37 }
  0xbb   :  { %242 = vrcp.f32 %v97_v62  ;;  %v109_v12 = vand.u32 2147483648, %v97_v62  ;;  %v124_v13 = vadd.f32 0.18741608, %v123_v8  ;;  %v107_v16 = vand.u32 2147483647, %v97_v62 }
  0xbc   :  { %v135_v2 = vadd.f32 0.4994258, %v134_v1  ;;  %vm103_vm1 = vweird.f32 %v97_v62  ;;  %v87_v26 = vmul.f32 %v86_v14, %v336_v21 }
  0xbd   :  { %v110_v19 = vor.u32 1.1754944e-38, %v109_v12  ;;  %v125_v22 = vmul.f32 %v124_v13, %v116_v37  ;;  %vm108_vm3 = vcmp.eq.f32.partialorder %v107_v16, 8.507059e+37 }
  0xbe   :  { %v136_v5 = vmul.f32 %v135_v2, %v116_v37 }
  0xbf   :  { %v126_v32 = vadd.f32 1.1283791, %v125_v22 }
  0xc0   :  { %v137_v6 = vadd.f32 1.0, %v136_v5 }
  0xc1   :  { %v243_v7 = vpop.eup %242  ;;  %v127_v21 = vmul.f32 %v126_v32, %v346_v29 }
  0xc2   :  { %v99_v10 = vmul.f32 %v243_v7, %v97_v62  ;;  %244 = vrcp.f32 %v137_v6  ;;  %vm104_vm0 = vweird.f32 %v243_v7  ;;  %v149_v31 = vand.u32 2147483648, %v137_v6 }
  0xc3   :  { %vm105_vm2 = vmor %vm103_vm1, %vm104_vm0  ;;  %v147_v34 = vand.u32 2147483647, %v137_v6  ;;  %vm143_vm5 = vweird.f32 %v137_v6 }
  0xc4   :  { %v100_v11 = vsub.f32 1.0, %v99_v10  ;;  %v150_v37 = vor.u32 1.1754944e-38, %v149_v31 }
  0xc5   :  { %vm148_vm7 = vcmp.eq.f32.partialorder %v147_v34, 8.507059e+37 }
  0xc6   :  { %v101_v15 = vmul.f32 %v243_v7, %v100_v11 }
  0xc8   :  { %v245_v17 = vpop.eup %244  ;;  %v102_v18 = vadd.f32 %v243_v7, %v101_v15 }
  0xc9   :  { %v139_v23 = vmul.f32 %v245_v17, %v137_v6  ;;  %vm144_vm4 = vweird.f32 %v245_v17 }
  0xca   :  { %v106_v27 = vsel %vm105_vm2, %v243_v7, %v102_v18  ;;  %vm145_vm6 = vmor %vm143_vm5, %vm144_vm4 }
  0xcb   :  { %v111_v24 = vsel %vm108_vm3, %v110_v19, %v106_v27  ;;  %v140_v28 = vsub.f32 1.0, %v139_v23 }
  0xcc   :  { %v112_v30 = vmul.f32 %v111_v24, %v87_v26 }
  0xcd   :  { %v141_v33 = vmul.f32 %v245_v17, %v140_v28 }
  0xce   :  { %v220_v35 = vclamps-f32 %v112_v30, 1.0 }
  0xcf   :  { %v142_v36 = vadd.f32 %v245_v17, %v141_v33 }
  0xd0   :  { %v155_v39 = vadd.f32 1.0, %v220_v35 }
  0xd1   :  { %v146_v40 = vsel %vm145_vm6, %v245_v17, %v142_v36 }
  0xd2   :  { %v151_v41 = vsel %vm148_vm7, %v150_v37, %v146_v40  ;;  %v157_v42 = vmul.f32 %v155_v39, %v71_v38 }
  0xd3   :  { %v152_v43 = vmul.f32 %v151_v41, %v127_v21 }
  0xd4   :  { %222 = vmatmul.msk.f32.vlgmr.msra.gmra.mxu1 %vm169_vm8, %v157_v42 }
  0xd5   :  { %v221_v44 = vclamps-f32 %v152_v43, 1.0 }
  0xd7   :  { %v156_v45 = vadd.f32 1.0, %v221_v44 }
  0xd9   :  { %v158_v47 = vmul.f32 %v156_v45, %v72_v46 }
  0xdc   :  { %223 = vmatmul.msk.f32.gmra.mxu1 %vm169_vm8, %v158_v47 }
 0x151   :  { %v193_v48 = vpop.f32.mrf.mxu1 }
 0x152   :  { %v212_v49 = vadd.f32 %v241_v20, %v193_v48 }
 0x154   :  { %214 = vst [vmem:[%s389_s5] sm:$0xff] %v212_v49 }
 0x159   :  { %v196_v29 = vpop.f32.mrf.mxu1 }
 0x15a   :  { %v213_v50 = vadd.f32 %v241_v20, %v196_v29 }
 0x15c   :  { %215 = vst [vmem:[%s389_s5 + $0x8] sm:$0xff] %v213_v50 }

</bundles_post_ra>
